<compile_context>
chip_gen: v7x
topology: tpu7x:2x2x1
jax: 0.10.0
libtpu: 0.0.40
codegen_flags: <defaults>
</compile_context>

<pallas_src>
import jax
import jax.numpy as jnp
from jax.experimental import pallas as pl
from jax.experimental.pallas import tpu as pltpu


MXU_DTYPE = jnp.bfloat16   # MXU operand dtype (accumulation stays f32)
ACT_DTYPE = jnp.bfloat16   # intermediate conv activation storage dtype
_VMEM_LIMIT = 32 * 1024 * 1024   # tiles below use far less; safe on v5e/v6e/v7x


def _round_up(x, m):
    return (x + m - 1) // m * m


def _pad2d(x, rows, cols, dtype):
    """Cast + zero-pad a 2D array to (rows, cols); no pad copy if already exact."""
    r, c = x.shape
    x = x.astype(dtype)
    if r == rows and c == cols:
        return x
    return jnp.zeros((rows, cols), dtype).at[:r, :c].set(x)


# ----------------------------------------------------------------------------
# Pallas kernel 1: tiled matmul with K accumulation + fused
# input-ReLU / bias / residual / output-ReLU epilogue (hot path for every conv)
# ----------------------------------------------------------------------------
def _make_matmul_kernel(apply_relu, relu_a, has_residual):
    def compute(a_ref, b_ref, bias_ref, r_ref, o_ref, acc_ref):
        @pl.when(pl.program_id(2) == 0)
        def _():
            acc_ref[...] = jnp.zeros_like(acc_ref)

        a = a_ref[...]
        if relu_a:                       # fused input ReLU (residual blocks)
            a = jnp.maximum(a, 0)
        acc_ref[...] += jnp.dot(a, b_ref[...],
                                preferred_element_type=jnp.float32)

        @pl.when(pl.program_id(2) == pl.num_programs(2) - 1)
        def _():
            y = acc_ref[...] + bias_ref[...]
            if has_residual:
                y = y + r_ref[...].astype(jnp.float32)
            if apply_relu:
                y = jnp.maximum(y, 0.0)
            o_ref[...] = y.astype(o_ref.dtype)

    if has_residual:
        def kernel(a_ref, b_ref, bias_ref, r_ref, o_ref, acc_ref):
            compute(a_ref, b_ref, bias_ref, r_ref, o_ref, acc_ref)
    else:
        def kernel(a_ref, b_ref, bias_ref, o_ref, acc_ref):
            compute(a_ref, b_ref, bias_ref, None, o_ref, acc_ref)
    return kernel


def pallas_matmul(a, b, bias=None, residual=None, apply_relu=False,
                  relu_a=False, out_dtype=jnp.float32):
    """(M, K) @ (K, N) [+bias] [+residual] [relu], f32 accumulation on the MXU."""
    M, K = a.shape
    K2, N = b.shape
    assert K == K2

    # Large M tiles: conv matmuls are tall-skinny (N<=256, K*Cin<=512), so the
    # previous 128-row tile was grid-step-overhead bound.  1024x512 bf16 A tile
    # + 1024x256 acc/out stay well under every generation's VMEM (incl. v7x 64MiB).
    TM = min(1024, _round_up(M, 8))
    TK = min(512, _round_up(K, 128))
    TN = min(256, _round_up(N, 128))
    Mp, Kp, Np = _round_up(M, TM), _round_up(K, TK), _round_up(N, TN)

    a_p = _pad2d(a, Mp, Kp, MXU_DTYPE)
    b_p = _pad2d(b, Kp, Np, MXU_DTYPE)
    if bias is None:
        bias = jnp.zeros((N,), jnp.float32)
    bias_p = _pad2d(bias.reshape(1, N).astype(jnp.float32), 1, Np, jnp.float32)

    in_specs = [pl.BlockSpec((TM, TK), lambda i, j, k: (i, k)),
                pl.BlockSpec((TK, TN), lambda i, j, k: (k, j)),
                pl.BlockSpec((1, TN), lambda i, j, k: (0, j))]
    operands = [a_p, b_p, bias_p]
    has_res = residual is not None
    if has_res:
        in_specs.append(pl.BlockSpec((TM, TN), lambda i, j, k: (i, j)))
        operands.append(_pad2d(residual, Mp, Np, residual.dtype))  # bf16 carried

    out = pl.pallas_call(
        _make_matmul_kernel(apply_relu, relu_a, has_res),
        out_shape=jax.ShapeDtypeStruct((Mp, Np), out_dtype),
        grid=(Mp // TM, Np // TN, Kp // TK),
        in_specs=in_specs,
        out_specs=pl.BlockSpec((TM, TN), lambda i, j, k: (i, j)),
        scratch_shapes=[pltpu.VMEM((TM, TN), jnp.float32)],
        compiler_params=pltpu.CompilerParams(
            dimension_semantics=("parallel", "parallel", "arbitrary"),
            vmem_limit_bytes=_VMEM_LIMIT),
    )(*operands)
    if Mp == M and Np == N:
        return out
    return out[:M, :N]


# ----------------------------------------------------------------------------
# Pallas kernel 2: vector quantisation (nearest-code search).  Codebook stays
# resident in VMEM; scores computed in bf16 (f32 acc); ||x||^2 / fit fused.
# Dequantisation is a cheap row-gather OUTSIDE the kernel (no one-hot matmul).
# ----------------------------------------------------------------------------
def _vq_kernel(x_ref, e_ref, esq_ref, idx_ref, fit_ref):
    x = x_ref[...]                                            # (TM, Dp) f32
    scores = jax.lax.dot_general(
        x.astype(MXU_DTYPE), e_ref[...],
        dimension_numbers=(((1,), (1,)), ((), ())),
        preferred_element_type=jnp.float32)                   # (TM, Kp) = x.e^T
    dist = esq_ref[...] - 2.0 * scores                        # ||e||^2 - 2 x.e
    dmin = jnp.min(dist, axis=-1, keepdims=True)
    kp = dist.shape[-1]
    lane = jax.lax.broadcasted_iota(jnp.int32, dist.shape, 1)
    idx_ref[...] = jnp.min(jnp.where(dist <= dmin, lane, kp),
                           axis=-1, keepdims=True)
    xsq = jnp.sum(x * x, axis=-1, keepdims=True)              # fused ||x||^2
    # squared distance to the chosen code; clamp tiny fp-cancellation negatives
    fit_ref[...] = jnp.maximum(dmin + xsq, 0.0)


def pallas_vq(x, codebook):
    """x: (M, D), codebook: (Kb, D) -> (indices (M,), x_q (M, D) f32, fit (M,))."""
    M, D = x.shape
    Kb, _ = codebook.shape
    Dp, Kp = _round_up(D, 128), _round_up(Kb, 128)
    TM = min(128, _round_up(M, 8))
    Mp = _round_up(M, TM)

    x_p = _pad2d(x.astype(jnp.float32), Mp, Dp, jnp.float32)
    e_f32 = _pad2d(codebook.astype(jnp.float32), Kp, Dp, jnp.float32)
    e_bf = e_f32.astype(MXU_DTYPE)
    esq = jnp.sum(e_f32 * e_f32, axis=-1)
    esq = jnp.where(jnp.arange(Kp) < Kb, esq, 1e30)[None, :]   # mask padded codes

    idx, fit = pl.pallas_call(
        _vq_kernel,
        out_shape=(jax.ShapeDtypeStruct((Mp, 1), jnp.int32),
                   jax.ShapeDtypeStruct((Mp, 1), jnp.float32)),
        grid=(Mp // TM,),
        in_specs=[pl.BlockSpec((TM, Dp), lambda i: (i, 0)),
                  pl.BlockSpec((Kp, Dp), lambda i: (0, 0)),    # codebook resident
                  pl.BlockSpec((1, Kp), lambda i: (0, 0))],    # ||e||^2 resident
        out_specs=(pl.BlockSpec((TM, 1), lambda i: (i, 0)),
                   pl.BlockSpec((TM, 1), lambda i: (i, 0))),
        compiler_params=pltpu.CompilerParams(
            dimension_semantics=("parallel",),
            vmem_limit_bytes=_VMEM_LIMIT),
    )(x_p, e_bf, esq)

    idx = idx[:M, 0]
    fit = fit[:M, 0]
    x_q = jnp.take(codebook.astype(jnp.float32), idx, axis=0)  # O(M*D) gather
    return idx, x_q, fit


# ----------------------------------------------------------------------------
# Pallas kernel 3: fused sum(|a-b|) / sum((a-b)^2) reduction with lane-dense
# per-tile partial sums (parallel grid; final tiny jnp.sum outside).
# ----------------------------------------------------------------------------
def _diff_reduce_kernel(a_ref, b_ref, pabs_ref, psq_ref):
    d = a_ref[...] - b_ref[...]                               # (TR, cols) f32
    rows, cols = d.shape
    acc_abs = jnp.zeros((8, cols), jnp.float32)
    acc_sq = jnp.zeros((8, cols), jnp.float32)
    for gi in range(rows // 8):                               # vreg-aligned adds
        ds = d[gi * 8:(gi + 1) * 8, :]
        acc_abs = acc_abs + jnp.abs(ds)
        acc_sq = acc_sq + ds * ds
    pabs_ref[...] = acc_abs
    psq_ref[...] = acc_sq


def pallas_diff_sums(a, b):
    a_f = a.reshape(-1).astype(jnp.float32)
    b_f = b.reshape(-1).astype(jnp.float32)
    n = a_f.shape[0]
    cols = 1024
    rows0 = max(pl.cdiv(n, cols), 1)
    TR = min(512, _round_up(rows0, 8))
    rows = _round_up(rows0, TR)
    size = rows * cols
    a_p = jnp.zeros((size,), jnp.float32).at[:n].set(a_f).reshape(rows, cols)
    b_p = jnp.zeros((size,), jnp.float32).at[:n].set(b_f).reshape(rows, cols)
    nt = rows // TR
    pabs, psq = pl.pallas_call(
        _diff_reduce_kernel,
        out_shape=(jax.ShapeDtypeStruct((nt * 8, cols), jnp.float32),
                   jax.ShapeDtypeStruct((nt * 8, cols), jnp.float32)),
        grid=(nt,),
        in_specs=[pl.BlockSpec((TR, cols), lambda i: (i, 0)),
                  pl.BlockSpec((TR, cols), lambda i: (i, 0))],
        out_specs=(pl.BlockSpec((8, cols), lambda i: (i, 0)),
                   pl.BlockSpec((8, cols), lambda i: (i, 0))),
        compiler_params=pltpu.CompilerParams(
            dimension_semantics=("parallel",),
            vmem_limit_bytes=_VMEM_LIMIT),
    )(a_p, b_p)
    return jnp.sum(pabs), jnp.sum(psq)


# ----------------------------------------------------------------------------
# Conv1d / ConvTranspose1d via im2col + Pallas matmul (glue + kernel hot path)
# ----------------------------------------------------------------------------
def conv1d(x, w, b, stride, pad, apply_relu=False, relu_input=False,
           residual=None, out_dtype=jnp.float32):
    """x: (N, T, Cin); w: (Cout, Cin, K) [PyTorch Conv1d layout]; b: (Cout,).

    pad: int (symmetric) or (pad_left, pad_right).  Input-ReLU / bias /
    residual-add / output-ReLU are all fused inside the Pallas matmul.
    # TODO(synk): im2col still materialises a K-duplicated patch matrix (bf16);
    # a tap-shifted (element-offset) A BlockSpec would remove that extra HBM
    # traffic for the 3x1 residual convs.
    """
    N, T, Cin = x.shape
    Cout, _, K = w.shape
    pl_, pr_ = (pad, pad) if isinstance(pad, int) else pad
    x_p = jnp.pad(x.astype(MXU_DTYPE), ((0, 0), (pl_, pr_), (0, 0)))
    T_out = (T + pl_ + pr_ - K) // stride + 1
    span = (T_out - 1) * stride + 1
    taps = [x_p[:, k:k + span:stride, :] for k in range(K)]
    patches = jnp.stack(taps, axis=2)                          # (N, T_out, K, Cin)
    a = patches.reshape(N * T_out, K * Cin)
    w_mat = jnp.transpose(w, (2, 1, 0)).reshape(K * Cin, Cout)
    res2d = None if residual is None else residual.reshape(N * T_out, Cout)
    y = pallas_matmul(a, w_mat, bias=b, residual=res2d, apply_relu=apply_relu,
                      relu_a=relu_input, out_dtype=out_dtype)
    return y.reshape(N, T_out, Cout)


def conv_transpose1d(x, w, b, stride, pad, apply_relu=False,
                     out_dtype=jnp.float32):
    """x: (N, T, Cin); w: (Cin, Cout, K) [PyTorch ConvTranspose1d layout].

    Polyphase (sub-pixel) decomposition: `stride` stride-1 convs on the
    undilated input whose outputs are interleaved -> no zero-dilation waste.
    """
    N, T, Cin = x.shape
    _, Cout, K = w.shape
    s = stride
    if s == 1:
        w_conv = jnp.transpose(jnp.flip(w, axis=-1), (1, 0, 2))
        return conv1d(x, w_conv, b, 1, K - 1 - pad, apply_relu=apply_relu,
                      out_dtype=out_dtype)
    T_out = (T - 1) * s - 2 * pad + K
    out = jnp.zeros((N, T_out, Cout), out_dtype)
    for r in range(s):
        ks = list(range(r, K, s))            # taps k with k ≡ r (mod s)
        L = len(ks)
        assert L > 0, "transposed-conv phase with no taps is unsupported"
        q_min = -((r - pad) // s)            # ceil((pad - r) / s)
        q_max = (T_out - 1 + pad - r) // s
        if q_max < q_min:
            continue
        pad_l = max(0, (L - 1) - q_min)
        pad_r = max(0, q_max - (T - 1))
        lo = max(0, q_min - (L - 1))
        hi = min(T, q_max + 1)
        # tap tau multiplies x[q - (L-1-tau)] with weight w[:, :, r + (L-1-tau)*s]
        w_sel = w[:, :, ks]                                     # (Cin, Cout, L)
        w_phase = jnp.transpose(w_sel[:, :, ::-1], (1, 0, 2))   # (Cout, Cin, L)
        ph = conv1d(x[:, lo:hi, :], w_phase, b, stride=1, pad=(pad_l, pad_r),
                    apply_relu=apply_relu, out_dtype=out_dtype)
        t0 = q_min * s + r - pad
        out = out.at[:, t0::s, :].set(ph)
    return out


class HParams:
    def __init__(self):
        self.bandwidth = {'l1': 1.0, 'l2': 1.0, 'spec': 1.0}
        self.linf_k = 4
        self.lmix_l1 = 0.0
        self.lmix_l2 = 0.0
        self.lmix_linf = 0.0


# ----------------------------------------------------------------------------
# VQVAE
# ----------------------------------------------------------------------------
class VQVAEPallas:
    def __init__(self, input_shape, down_t, stride_t, emb_width, l_bins, mu, commit,
                 spectral, multispectral, multiplier=1, use_bottleneck=True, **block_kwargs):
        self.sample_length = input_shape[0]
        x_shape, x_channels = input_shape[:-1], input_shape[-1]
        self.x_shape = x_shape
        self.x_channels = x_channels
        self.downsample = stride_t ** down_t
        self.z_shape = x_shape[0] // self.downsample
        self.multiplier = multiplier
        # NOTE: Jukebox's Encoder/Decoder/Bottleneck class definitions were not
        # provided; a representative strided-conv encoder / transposed-conv
        # decoder with `depth` residual 3x1 blocks per level is used.
        self.width = block_kwargs['width'] * multiplier
        self.depth = block_kwargs['depth'] * multiplier
        self.down_t = down_t
        self.stride_t = stride_t
        self.l_bins = l_bins
        self.mu = mu
        self.commit = commit
        self.spectral = spectral
        self.multispectral = multispectral
        self.use_bottleneck = use_bottleneck
        self.emb_width = emb_width
        self.params = None

    def init_params(self, key):
        def nxt():
            nonlocal key
            key, sub = jax.random.split(key)
            return sub
        s = 0.1
        conv = lambda co, ci, k: dict(w=s * jax.random.normal(nxt(), (co, ci, k), jnp.float32),
                                      b=jnp.zeros((co,), jnp.float32))
        convT = lambda ci, co, k: dict(w=s * jax.random.normal(nxt(), (ci, co, k), jnp.float32),
                                       b=jnp.zeros((co,), jnp.float32))
        p = {}
        kT = 2 * self.stride_t
        enc, enc_res = [], []
        cin = self.x_channels
        for _ in range(self.down_t):
            enc.append(conv(self.width, cin, kT))
            enc_res.append([conv(self.width, self.width, 3) for _ in range(self.depth)])
            cin = self.width
        p['enc'], p['enc_res'] = enc, enc_res
        p['enc_out'] = conv(self.emb_width, self.width, 3)
        p['codebook'] = s * jax.random.normal(nxt(), (self.l_bins, self.emb_width), jnp.float32)
        p['dec_in'] = conv(self.width, self.emb_width, 3)
        dec, dec_res = [], []
        for _ in range(self.down_t):
            dec_res.append([conv(self.width, self.width, 3) for _ in range(self.depth)])
            dec.append(convT(self.width, self.width, kT))
        p['dec'], p['dec_res'] = dec, dec_res
        p['dec_out'] = conv(self.x_channels, self.width, 3)
        self.params = p

    def _encode(self, h):
        p = self.params
        for lvl in range(self.down_t):
            c = p['enc'][lvl]
            h = conv1d(h, c['w'], c['b'], self.stride_t, self.stride_t // 2,
                       apply_relu=True, out_dtype=ACT_DTYPE)
            for r in p['enc_res'][lvl]:
                # h = h + conv(relu(h)); input-ReLU and residual add fused in-kernel.
                h = conv1d(h, r['w'], r['b'], 1, 1, relu_input=True,
                           residual=h, out_dtype=ACT_DTYPE)
        c = p['enc_out']
        return conv1d(h, c['w'], c['b'], 1, 1, out_dtype=jnp.float32)

    def _decode_latent(self, h):
        p = self.params
        c = p['dec_in']
        h = conv1d(h, c['w'], c['b'], 1, 1, apply_relu=True, out_dtype=ACT_DTYPE)
        for lvl in range(self.down_t):
            for r in p['dec_res'][lvl]:
                h = conv1d(h, r['w'], r['b'], 1, 1, relu_input=True,
                           residual=h, out_dtype=ACT_DTYPE)
            c = p['dec'][lvl]
            h = conv_transpose1d(h, c['w'], c['b'], self.stride_t,
                                 self.stride_t // 2, apply_relu=True,
                                 out_dtype=ACT_DTYPE)
        c = p['dec_out']
        return conv1d(h, c['w'], c['b'], 1, 1, out_dtype=jnp.float32)

    def forward(self, x, hps, loss_fn='l1', full_metrics=True):
        N, T, C = x.shape
        assert T == self.sample_length and C == self.x_channels
        x_in = x.astype(jnp.float32)             # preprocess (layout stays NTC)
        x_enc = self._encode(x_in)               # (N, z_shape, emb_width) f32

        if self.use_bottleneck:
            flat = x_enc.reshape(-1, self.emb_width)
            idx, xq_flat, fit = pallas_vq(flat, self.params['codebook'])
            z = idx.reshape(N, -1)
            x_quantised = xq_flat.reshape(x_enc.shape)   # straight-through forward value
            # commit loss from the VQ kernel: sum(fit) == sum((x_enc - x_q)^2)
            commit_loss = jnp.sum(fit) / x_enc.size
            counts = jnp.bincount(idx, length=self.l_bins)
            probs = counts / jnp.maximum(idx.shape[0], 1)
            entropy = -jnp.sum(probs * jnp.log(probs + 1e-8))
            quantiser_metric = dict(fit=jnp.mean(fit), entropy=entropy,
                                    usage=jnp.sum(counts > 0).astype(jnp.float32))
        else:
            z, x_quantised = x_enc, x_enc
            commit_loss = jnp.asarray(0.0, jnp.float32)
            quantiser_metric = {}

        x_out = self._decode_latent(x_quantised)          # (N, T, C) f32
        assert x_out.shape == x_in.shape                  # assert_shape

        # ---- losses: one fused |d| / d^2 reduction, reused everywhere -------
        x_target = x.astype(jnp.float32)
        n_el = x_target.size
        sabs, ssq = pallas_diff_sums(x_out, x_target)
        l1_loss = sabs / n_el / hps.bandwidth['l1']
        l2_loss = ssq / n_el / hps.bandwidth['l2']

        need_linf = (full_metrics or loss_fn == 'linf'
                     or (loss_fn == 'lmix' and bool(hps.lmix_linf)))
        if need_linf:
            residual_sq = ((x_out - x_target) ** 2).reshape(N, -1)
            linf_vals, _ = jax.lax.top_k(residual_sq, hps.linf_k)
            linf_loss = jnp.mean(linf_vals) / hps.bandwidth['l2']
        else:
            linf_loss = jnp.asarray(0.0, jnp.float32)

        def recons(fn):
            if fn == 'l1':
                return l1_loss
            if fn == 'l2':
                return l2_loss
            if fn == 'linf':
                return linf_loss
            if fn == 'lmix':
                loss = jnp.asarray(0.0, jnp.float32)
                if hps.lmix_l1:
                    loss = loss + hps.lmix_l1 * l1_loss
                if hps.lmix_l2:
                    loss = loss + hps.lmix_l2 * l2_loss
                if hps.lmix_linf:
                    loss = loss + hps.lmix_linf * linf_loss
                return loss
            raise ValueError(f'Unknown loss_fn {fn}')

        recons_loss = recons(loss_fn)

        # TODO(synk): spectral_loss / multispectral_loss / spectral_convergence are
        # STFT-based and have no clean Pallas equivalent here; reported as 0.
        spec_loss = jnp.asarray(0.0, jnp.float32)
        multispec_loss = jnp.asarray(0.0, jnp.float32)
        sc = jnp.asarray(0.0, jnp.float32)

        loss = (recons_loss + self.spectral * spec_loss
                + self.multispectral * multispec_loss + self.commit * commit_loss)

        metrics = dict(recons_loss=recons_loss, spectral_loss=spec_loss,
                       multispectral_loss=multispec_loss, spectral_convergence=sc,
                       l2_loss=l2_loss, l1_loss=l1_loss, linf_loss=linf_loss,
                       commit_loss=commit_loss, **quantiser_metric)
        return x_out, loss, metrics


if __name__ == "__main__":
    key = jax.random.PRNGKey(0)
    kx, kp = jax.random.split(key)
    N, T, C = 2, 64, 4
    x = jax.random.normal(kx, (N, T, C), jnp.float32)

    model = VQVAEPallas(input_shape=(T, C), down_t=2, stride_t=2, emb_width=32,
                        l_bins=64, mu=0.99, commit=0.02, spectral=0.0, multispectral=0.0,
                        multiplier=1, use_bottleneck=True, width=32, depth=1)
    model.init_params(kp)

    hps = HParams()
    x_out, loss, metrics = model.forward(x, hps, loss_fn='l1')
    jax.block_until_ready((x_out, loss, metrics))
    assert x_out.shape == (N, T, C)
    print("KERNEL_OK")
</pallas_src>

<mosaic_0001>
module attributes {stable_mosaic.version = 11 : i64} {
  func.func @kernel(%arg0: i32, %arg1: i32, %arg2: i32, %arg3: memref<64x128xbf16, #tpu.memory_space<vmem>>, %arg4: memref<128x128xbf16, #tpu.memory_space<vmem>>, %arg5: memref<1x128xf32, #tpu.memory_space<vmem>>, %arg6: memref<64x128xbf16, #tpu.memory_space<vmem>>, %arg7: memref<64x128xf32, #tpu.memory_space<vmem>>) attributes {dimension_semantics = [#tpu.dimension_semantics<parallel>, #tpu.dimension_semantics<parallel>, #tpu.dimension_semantics<arbitrary>], iteration_bounds = array<i64: 1, 1, 1>, scalar_prefetch = 0 : i64, scratch_operands = 1 : i64, tpu.core_type = #tpu.core_type<tc>, window_params = [{transform_indices = @transform_0, window_bounds = array<i64: 64, 128>}, {transform_indices = @transform_1, window_bounds = array<i64: 128, 128>}, {transform_indices = @transform_2, window_bounds = array<i64: 1, 128>}, {transform_indices = @transform_3, window_bounds = array<i64: 64, 128>}]} {
    %c0_i32 = arith.constant 0 : i32
    %0 = arith.cmpi eq, %arg2, %c0_i32 : i32
    %1 = arith.extui %0 : i1 to i32
    %c0_i32_0 = arith.constant 0 : i32
    %2 = arith.cmpi ne, %1, %c0_i32_0 : i32
    scf.if %2 {
      %cst_10 = arith.constant 0.000000e+00 : f32
      %12 = vector.broadcast %cst_10 : f32 to vector<64x128xf32>
      %c0_11 = arith.constant 0 : index
      %c0_12 = arith.constant 0 : index
      %13 = vector.load %arg7[%c0_11, %c0_12] : memref<64x128xf32, #tpu.memory_space<vmem>>, vector<64x128xf32>
      tpu.vector_store %arg7[%c0_11, %c0_12], %12 {strides = array<i32>} : memref<64x128xf32, #tpu.memory_space<vmem>>, vector<64x128xf32>,
    } else {
    }
    %c0 = arith.constant 0 : index
    %c0_1 = arith.constant 0 : index
    %3 = vector.load %arg3[%c0, %c0_1] : memref<64x128xbf16, #tpu.memory_space<vmem>>, vector<64x128xbf16>
    %c0_2 = arith.constant 0 : index
    %c0_3 = arith.constant 0 : index
    %4 = vector.load %arg7[%c0_2, %c0_3] : memref<64x128xf32, #tpu.memory_space<vmem>>, vector<64x128xf32>
    %c0_4 = arith.constant 0 : index
    %c0_5 = arith.constant 0 : index
    %5 = vector.load %arg4[%c0_4, %c0_5] : memref<128x128xbf16, #tpu.memory_space<vmem>>, vector<128x128xbf16>
    %cst = arith.constant dense<0.000000e+00> : vector<64x128xf32>
    %6 = tpu.matmul %3, %5, %cst {dimension_numbers = #tpu.dot_dimension_numbers<[1], [0], [0], [1], [0, 0, 1, 1], [], []>} : vector<64x128xbf16>, vector<128x128xbf16>, vector<64x128xf32> -> vector<64x128xf32>
    %7 = arith.addf %4, %6 : vector<64x128xf32>
    %c0_6 = arith.constant 0 : index
    %c0_7 = arith.constant 0 : index
    %8 = vector.load %arg7[%c0_6, %c0_7] : memref<64x128xf32, #tpu.memory_space<vmem>>, vector<64x128xf32>
    tpu.vector_store %arg7[%c0_6, %c0_7], %7 {strides = array<i32>} : memref<64x128xf32, #tpu.memory_space<vmem>>, vector<64x128xf32>,
    %c0_i32_8 = arith.constant 0 : i32
    %9 = arith.cmpi eq, %arg2, %c0_i32_8 : i32
    %10 = arith.extui %9 : i1 to i32
    %c0_i32_9 = arith.constant 0 : i32
    %11 = arith.cmpi ne, %10, %c0_i32_9 : i32
    scf.if %11 {
      %c0_10 = arith.constant 0 : index
      %c0_11 = arith.constant 0 : index
      %12 = vector.load %arg7[%c0_10, %c0_11] : memref<64x128xf32, #tpu.memory_space<vmem>>, vector<64x128xf32>
      %c0_12 = arith.constant 0 : index
      %c0_13 = arith.constant 0 : index
      %13 = vector.load %arg5[%c0_12, %c0_13] : memref<1x128xf32, #tpu.memory_space<vmem>>, vector<1x128xf32>
      %14 = vector.broadcast %13 : vector<1x128xf32> to vector<64x128xf32>
      %15 = arith.addf %12, %14 : vector<64x128xf32>
      %cst_14 = arith.constant 0.000000e+00 : f32
      %16 = vector.broadcast %cst_14 : f32 to vector<64x128xf32>
      %17 = arith.maximumf %15, %16 : vector<64x128xf32>
      %18 = arith.truncf %17 : vector<64x128xf32> to vector<64x128xbf16>
      %c0_15 = arith.constant 0 : index
      %c0_16 = arith.constant 0 : index
      %19 = vector.load %arg6[%c0_15, %c0_16] : memref<64x128xbf16, #tpu.memory_space<vmem>>, vector<64x128xbf16>
      tpu.vector_store %arg6[%c0_15, %c0_16], %18 {strides = array<i32>} : memref<64x128xbf16, #tpu.memory_space<vmem>>, vector<64x128xbf16>,
    } else {
    }
    return
  }
  func.func @transform_0(%arg0: i32, %arg1: i32, %arg2: i32) -> (i32, i32) {
    %c0_i32 = arith.constant 0 : i32
    return %arg0, %arg2 : i32, i32
  }
  func.func @transform_1(%arg0: i32, %arg1: i32, %arg2: i32) -> (i32, i32) {
    %c0_i32 = arith.constant 0 : i32
    return %arg2, %arg1 : i32, i32
  }
  func.func @transform_2(%arg0: i32, %arg1: i32, %arg2: i32) -> (i32, i32) {
    %c0_i32 = arith.constant 0 : i32
    %c0_i32_0 = arith.constant 0 : i32
    return %c0_i32, %arg1 : i32, i32
  }
  func.func @transform_3(%arg0: i32, %arg1: i32, %arg2: i32) -> (i32, i32) {
    %c0_i32 = arith.constant 0 : i32
    return %arg0, %arg1 : i32, i32
  }
}

</mosaic_0001>

<bundles_post_ra>
// kernel: tpu_custom_call.1
= control target key start
LH: loop header
LB: loop body
LE: loop exit
PB: predicated region body
PF: predicated region fallthrough
CT: control target
= control target key end

     0   :  { %8 = vsyncpa [#allocation4], 0  ;;  %s599_s0 = inlined_call_operand.hbm [shape: bf16[64,128], index: 0, kind: input, shape index: {}]   ;;  %s600_s1 = inlined_call_operand.hbm [shape: bf16[128,128], index: 1, kind: input, shape index: {}]   ;;  %s601_s2 = inlined_call_operand.vmem [shape: f32[1,128], index: 2, kind: input, shape index: {}]   ;;  %s602_s3 = inlined_call_operand.hbm [shape: bf16[64,128], index: 3, kind: output, shape index: {}]  }
   0x1   :  { %9 = vsyncpa [#allocation7], 0 }
   0x2   :  { %10 = vsyncpa [#allocation5], 0  ;;  %s526_s12 = smov [#allocation3]   ;;  %s454_s16 = scalar_lea.hbm %s599_s0, 512 }
   0x3   :  { %s16_s13 = sshll.u32 %s526_s12, 4  ;;  %p455_p0 = scmp.ne.s32.totalorder %s599_s0, %s454_s16  ;;  %s17_s13 = int_to_ptr.vmem [resolvable:$true] %s16_s13 }
   0x4   :  { %p458_p1 = scmp.lt.u32.totalorder %s454_s16, %s599_s0 }
   0x6   :  { %p460_p2 = pnand %p458_p1, %p455_p0 }
   0x8   :  { %463 = shalt.err (!%p460_p2)
}
   0x9   :  { %s464_s21 = scalar_lea.vmem %s17_s13, 512  ;;  %p469_p4 = scmp.lt.s32.totalorder %s17_s13, %s17_s13 }
   0xa   :  { %p465_p3 = scmp.ne.s32.totalorder %s17_s13, %s464_s21  ;;  %p470_p5 = scmp.lt.s32.totalorder %s464_s21, %s464_s21 }
   0xc   :  { %p471_p6 = por %p470_p5, %p469_p4 }
   0xe   :  { %p472_p7 = pnand %p471_p6, %p465_p3 }
  0x10   :  { %475 = shalt.err (!%p472_p7)
}
  0x11   :  { %s527_s22 = smov 64   ;;  %s528_s23 = smov 4  }
  0x12   :  { %22 = dma.hbm_to_vmem [thread:$0]  %s599_s0, 512, %s17_s13, [#allocation4], %s527_s22, %s527_s22, %s528_s23  }
  0x13   :  { %s529_s26 = smov [#allocation6]   ;;  %s476_s30 = scalar_lea.hbm %s600_s1, 1024 }
  0x14   :  { %s28_s27 = sshll.u32 %s529_s26, 4  ;;  %p477_p8 = scmp.ne.s32.totalorder %s600_s1, %s476_s30  ;;  %s29_s27 = int_to_ptr.vmem [resolvable:$true] %s28_s27 }
  0x15   :  { %p480_p9 = scmp.lt.u32.totalorder %s476_s30, %s600_s1 }
  0x17   :  { %p482_p10 = pnand %p480_p9, %p477_p8 }
  0x19   :  { %485 = shalt.err (!%p482_p10)
}
  0x1a   :  { %s486_s8 = scalar_lea.vmem %s29_s27, 1024  ;;  %p491_p12 = scmp.lt.s32.totalorder %s29_s27, %s29_s27 }
  0x1b   :  { %p487_p11 = scmp.ne.s32.totalorder %s29_s27, %s486_s8  ;;  %p492_p13 = scmp.lt.s32.totalorder %s486_s8, %s486_s8 }
  0x1d   :  { %p493_p0 = por %p492_p13, %p491_p12 }
  0x1f   :  { %p494_p1 = pnand %p493_p0, %p487_p11 }
  0x21   :  { %497 = shalt.err (!%p494_p1)
}
  0x22   :  { %34 = dma.hbm_to_vmem [thread:$0]  %s600_s1, 1024, %s29_s27, [#allocation7], %s527_s22, %s527_s22, %s528_s23  }
  0x23   :  { %520 = dma.done.wait [#allocation4], 512  }
  0x24   :  { %521 = vsyncadd [#allocation4], 4294966784 }
  0x25   :  { %522 = dma.done.wait [#allocation7], 1024  }
  0x26   :  { %523 = vsyncadd [#allocation7], 4294966272  ;;  %v442_v0 = vld [vmem:[#allocation6] sm:$0xff]   ;;  %v443_v1 = vld [vmem:[#allocation6 + $0x8] sm:$0xff]  }
  0x27   :  { %397 = vmatprep.subr.bf16.mxu0 %v442_v0  ;;  %421 = vmatprep.subr.bf16.mxu1 %v442_v0  ;;  %v444_v2 = vld [vmem:[#allocation6 + $0x10] sm:$0xff]   ;;  %v445_v3 = vld [vmem:[#allocation6 + $0x18] sm:$0xff]   ;;  %v450_v4 = vld [vmem:[#allocation3] sm:$0xff]  }
  0x28   :  { %398 = vmatpush3.bf16.msra.mxu0 %v442_v0  ;;  %429 = vmatpush3.bf16.msra.mxu1 %v442_v0  ;;  %v451_v5 = vld [vmem:[#allocation3 + $0x10] sm:$0xff]   ;;  %v446_v6 = vld [vmem:[#allocation6 + $0x20] sm:$0xff]   ;;  %v447_v7 = vld [vmem:[#allocation6 + $0x28] sm:$0xff]  }
  0x29   :  { %399 = vmatprep.subr.bf16.mxu0 %v443_v1  ;;  %422 = vmatprep.subr.bf16.mxu1 %v443_v1  ;;  %v448_v8 = vld [vmem:[#allocation6 + $0x30] sm:$0xff]   ;;  %v449_v9 = vld [vmem:[#allocation6 + $0x38] sm:$0xff]   ;;  %v452_v10 = vld [vmem:[#allocation3 + $0x8] sm:$0xff]  }
  0x2a   :  { %413 = vmatprep.mubr.bf16.mxu0 %v450_v4  ;;  %417 = vmatprep.mubr.bf16.mxu1 %v451_v5  ;;  %v453_v11 = vld [vmem:[#allocation3 + $0x18] sm:$0xff]   ;;  %v345_v12 = vld [vmem:[%s601_s2] ss:$0 sm:$0xff]  ;;  %s530_s2 = smov [#allocation8]  }
  0x2b   :  { %s320_s11 = sshll.u32 %s530_s2, 4  ;;  %s321_s11 = int_to_ptr.vmem [resolvable:$true] %s320_s11 }
  0x2c   :  { %400 = vmatpush3.bf16.msra.mxu0 %v443_v1  ;;  %430 = vmatpush3.bf16.msra.mxu1 %v443_v1  ;;  %s498_s12 = scalar_lea.vmem %s321_s11, 512  ;;  %p503_p3 = scmp.lt.s32.totalorder %s321_s11, %s321_s11 }
  0x2d   :  { %401 = vmatprep.subr.bf16.mxu0 %v444_v2  ;;  %423 = vmatprep.subr.bf16.mxu1 %v444_v2  ;;  %p499_p2 = scmp.ne.s32.totalorder %s321_s11, %s498_s12  ;;  %p504_p4 = scmp.lt.s32.totalorder %s498_s12, %s498_s12 }
  0x2f   :  { %p505_p5 = por %p504_p4, %p503_p3 }
  0x30   :  { %402 = vmatpush3.bf16.msra.mxu0 %v444_v2  ;;  %431 = vmatpush3.bf16.msra.mxu1 %v444_v2 }
  0x31   :  { %403 = vmatprep.subr.bf16.mxu0 %v445_v3  ;;  %424 = vmatprep.subr.bf16.mxu1 %v445_v3  ;;  %p506_p6 = pnand %p505_p5, %p499_p2 }
  0x34   :  { %404 = vmatpush3.bf16.msra.mxu0 %v445_v3  ;;  %432 = vmatpush3.bf16.msra.mxu1 %v445_v3 }
  0x35   :  { %405 = vmatprep.subr.bf16.mxu0 %v446_v6  ;;  %425 = vmatprep.subr.bf16.mxu1 %v446_v6 }
  0x38   :  { %406 = vmatpush3.bf16.msra.mxu0 %v446_v6  ;;  %433 = vmatpush3.bf16.msra.mxu1 %v446_v6 }
  0x39   :  { %407 = vmatprep.subr.bf16.mxu0 %v447_v7  ;;  %426 = vmatprep.subr.bf16.mxu1 %v447_v7 }
  0x3c   :  { %408 = vmatpush3.bf16.msra.mxu0 %v447_v7  ;;  %434 = vmatpush3.bf16.msra.mxu1 %v447_v7 }
  0x3d   :  { %409 = vmatprep.subr.bf16.mxu0 %v448_v8  ;;  %427 = vmatprep.subr.bf16.mxu1 %v448_v8 }
  0x40   :  { %410 = vmatpush3.bf16.msra.mxu0 %v448_v8  ;;  %435 = vmatpush3.bf16.msra.mxu1 %v448_v8 }
  0x41   :  { %411 = vmatprep.subr.bf16.mxu0 %v449_v9  ;;  %428 = vmatprep.subr.bf16.mxu1 %v449_v9 }
  0x44   :  { %412 = vmatpush3.bf16.msra.mxu0 %v449_v9  ;;  %436 = vmatpush3.bf16.msra.mxu1 %v449_v9 }
  0x47   :  { %414 = vmatmul.mubr.bf16.vlgmr.msra.gmra.mrb[0].mxu0 %v452_v10  ;;  %418 = vmatmul.mubr.bf16.vlgmr.msra.gmra.mrb[0].mxu1 %v453_v11 }
 0x11a   :  { %v415_v13 = vpop.f32.mrb[0].mxu0  ;;  %v419_v14 = vpop.f32.mrb[0].mxu1 }
 0x11b   :  { %v261_v15 = vadd.f32 %v415_v13, %v345_v12  ;;  %v265_v16 = vadd.f32 %v419_v14, %v345_v12  ;;  %v194_v17 = vpop.f32.mrb[1].mxu0  ;;  %v210_v18 = vpop.f32.mrb[1].mxu1 }
 0x11c   :  { %v259_v19 = vadd.f32 %v345_v12, %v194_v17  ;;  %v263_v20 = vadd.f32 %v345_v12, %v210_v18  ;;  %v416_v21 = vpop.f32.mrb[2].mxu0  ;;  %v420_v22 = vpop.f32.mrb[2].mxu1 }
 0x11d   :  { %v262_v23 = vadd.f32 %v416_v21, %v345_v12  ;;  %v266_v24 = vadd.f32 %v420_v22, %v345_v12  ;;  %v197_v25 = vpop.f32.mrb[3].mxu0  ;;  %v213_v26 = vpop.f32.mrb[3].mxu1  ;;  %v269_v29 = vmax.f32 %v261_v15, 0.0  ;;  %v273_v30 = vmax.f32 %v265_v16, 0.0 }
 0x11e   :  { %v260_v27 = vadd.f32 %v345_v12, %v197_v25  ;;  %v264_v28 = vadd.f32 %v345_v12, %v213_v26  ;;  %v267_v33 = vmax.f32 %v259_v19, 0.0  ;;  %v271_v34 = vmax.f32 %v263_v20, 0.0 }
 0x11f   :  { %v270_v31 = vmax.f32 %v262_v23, 0.0  ;;  %v274_v32 = vmax.f32 %v266_v24, 0.0 }
 0x120   :  { %v268_v35 = vmax.f32 %v260_v27, 0.0  ;;  %v272_v36 = vmax.f32 %v264_v28, 0.0 }
 0x121   :  { %v370_v37 = vpack.c.bf16 %v270_v31, %v269_v29  ;;  %v380_v38 = vpack.c.bf16 %v274_v32, %v273_v30 }
 0x122   :  { %v365_v39 = vpack.c.bf16 %v268_v35, %v267_v33  ;;  %v375_v40 = vpack.c.bf16 %v272_v36, %v271_v34 }
 0x123   :  { %382 = vst [vmem:[#allocation8 + $0x8] sm:$0xff] %v370_v37   ;;  %384 = vst [vmem:[#allocation8 + $0x18] sm:$0xff] %v380_v38  }
 0x124   :  { %366 = vst [vmem:[#allocation8] sm:$0xff] %v365_v39   ;;  %383 = vst [vmem:[#allocation8 + $0x10] sm:$0xff] %v375_v40  }
 0x125   :  { %509 = shalt.err (!%p506_p6)
}
 0x126   :  { %s510_s15 = scalar_lea.hbm %s602_s3, 512 }
 0x127   :  { %p511_p7 = scmp.ne.s32.totalorder %s602_s3, %s510_s15  ;;  %p514_p8 = scmp.lt.u32.totalorder %s510_s15, %s602_s3 }
 0x129   :  { %p516_p9 = pnand %p514_p8, %p511_p7 }
 0x12b   :  { %519 = shalt.err (!%p516_p9)
}
 0x12c   :  { %326 = dma.vmem_to_hbm [thread:$0]  %s321_s11, 512, %s602_s3, [#allocation5], %s527_s22, %s527_s22, %s528_s23  }
 0x12d   :  { %524 = dma.done.wait [#allocation5], 512  }
 0x12e   :  { %525 = vsyncadd [#allocation5], 4294966784 }
 0x12f   :  { %330 = vsyncpa [#allocation4], 1 }
 0x130   :  { %331 = vsyncpa [#allocation7], 1 }
 0x131   :  { %332 = vsyncpa [#allocation5], 1 }

</bundles_post_ra>
